<compile_context>
chip_gen: v7x
topology: tpu7x:2x2x1
jax: 0.10.0
libtpu: 0.0.40
codegen_flags: <defaults>
</compile_context>

<pallas_src>
import jax
import jax.numpy as jnp
from jax.experimental import pallas as pl
from jax.experimental.pallas import tpu as pltpu


# ---------------------------------------------------------------------------
# Kernel
# ---------------------------------------------------------------------------
def hdbnet_kernel(x_ref,
                  w1_ref, b1_ref,
                  w2_ref, b2_ref,
                  w3_ref, b3_ref,
                  w4_ref, b4_ref,
                  o_ref):
    # bf16 matmul operands (weights pre-cast on host), f32 accumulate,
    # f32 bias + ReLU on the VPU.
    x = x_ref[...].astype(jnp.bfloat16)

    h1 = jnp.dot(x, w1_ref[...], preferred_element_type=jnp.float32) + b1_ref[...]
    h1 = jnp.maximum(h1, 0.0)

    h2 = jnp.dot(h1.astype(jnp.bfloat16), w2_ref[...],
                 preferred_element_type=jnp.float32) + b2_ref[...]
    h2 = jnp.maximum(h2, 0.0)

    h3 = jnp.dot(h2.astype(jnp.bfloat16), w3_ref[...],
                 preferred_element_type=jnp.float32) + b3_ref[...]
    h3 = jnp.maximum(h3, 0.0)

    # Final 32 -> 1 layer computed transposed so the output block is a
    # lane-dense (1, TILE_B) slab: (1, 32) . (TILE_B, 32)^T -> (1, TILE_B).
    out_t = jax.lax.dot_general(
        w4_ref[...], h3.astype(jnp.bfloat16),
        dimension_numbers=(((1,), (1,)), ((), ())),
        preferred_element_type=jnp.float32,
    ) + b4_ref[...]                      # b4 is (1, 1), broadcasts over lanes
    o_ref[...] = out_t.astype(o_ref.dtype)


# ---------------------------------------------------------------------------
# Tile-size / VMEM budgeting
# ---------------------------------------------------------------------------
_HIDDEN_BYTES_PER_ROW = (128 + 64 + 32) * 6          # f32 + bf16 activation temps
_VMEM_TILE_BUDGET = 24 << 20                          # conservative across gens


def _num_x_buffers(input_dim):
    # Triple-buffer the x stream only when the per-step DMA is large.
    return 3 if input_dim >= 512 else 2


def _pick_tile_b(batch, input_dim, requested=None):
    """Batch tile: big enough to amortize ~0.35 us/step grid overhead, small
    enough for v7x VMEM, and leaving >=2 grid steps when the batch allows."""
    padded_in = -(-max(input_dim, 1) // 128) * 128    # lane-padded width in VMEM
    n_x_bufs = _num_x_buffers(input_dim)
    bytes_per_row = (n_x_bufs * padded_in * 4         # pipelined x blocks (f32)
                     + padded_in * 2                  # in-kernel bf16 copy of x
                     + _HIDDEN_BYTES_PER_ROW          # h1/h2/h3 temps
                     + 2 * 4)                         # double-buffered (1,tb) out
    cap = max(128, (_VMEM_TILE_BUDGET // bytes_per_row) // 128 * 128)
    target = requested if requested is not None else 4096
    tb = min(target, cap)
    # Keep at least 2 grid steps when the batch is big enough (v7x: 2 TCs
    # split the "parallel" batch axis; a single-step grid idles one of them).
    half = max(128, -(-((batch + 1) // 2) // 128) * 128)
    tb = max(128, min(tb, half))
    return tb


def _vmem_limit_bytes(tile_b, input_dim, weight_bytes):
    padded_in = -(-max(input_dim, 1) // 128) * 128
    n_x_bufs = _num_x_buffers(input_dim)
    need = (n_x_bufs * tile_b * padded_in * 4
            + tile_b * _HIDDEN_BYTES_PER_ROW
            + 2 * tile_b * 4
            + 2 * weight_bytes
            + (1 << 20))                              # slack for compiler temps
    # Raise past v5e's 16 MiB default; stay well under v7x's 64 MiB physical.
    return int(min(max(need, 16 << 20), 48 << 20))


# ---------------------------------------------------------------------------
# Wrapper
# ---------------------------------------------------------------------------
def hdbnet_forward(x, params, *, tile_b=None):
    """x: (B, input_dim) f32. params: [(W_t, b)] with W_t (in, out), b (1, out).
    Returns (B, 1) f32."""
    B, input_dim = x.shape
    tb = _pick_tile_b(B, input_dim, tile_b)
    b_pad = pl.cdiv(B, tb) * tb
    if b_pad != B:
        x = jnp.pad(x, ((0, b_pad - B), (0, 0)))

    (w1, b1), (w2, b2), (w3, b3), (w4, b4) = params
    # MXU operands in bf16; biases stay f32 for the VPU adds.
    w1 = w1.astype(jnp.bfloat16)
    w2 = w2.astype(jnp.bfloat16)
    w3 = w3.astype(jnp.bfloat16)
    w4_row = w4.reshape(1, -1).astype(jnp.bfloat16)   # (32, 1) -> (1, 32)

    grid = (b_pad // tb,)

    def const_spec(shape):
        return pl.BlockSpec(shape, lambda i: (0, 0))   # VMEM-resident across grid

    if input_dim >= 512:
        x_spec = pl.BlockSpec((tb, input_dim), lambda i: (i, 0),
                              pipeline_mode=pl.Buffered(3))
    else:
        x_spec = pl.BlockSpec((tb, input_dim), lambda i: (i, 0))

    in_specs = [
        x_spec,                                        # x batch tile
        const_spec(w1.shape), const_spec(b1.shape),
        const_spec(w2.shape), const_spec(b2.shape),
        const_spec(w3.shape), const_spec(b3.shape),
        const_spec(w4_row.shape), const_spec(b4.shape),
    ]
    out_specs = pl.BlockSpec((1, tb), lambda i: (0, i))

    weight_bytes = (sum(int(w.size) * 2 for w in (w1, w2, w3, w4_row))
                    + sum(int(b.size) * 4 for b in (b1, b2, b3, b4)))
    flops = 2 * b_pad * (input_dim * 128 + 128 * 64 + 64 * 32 + 32 * 1)
    bytes_accessed = b_pad * input_dim * 4 + b_pad * 4 + weight_bytes

    out_t = pl.pallas_call(
        hdbnet_kernel,
        out_shape=jax.ShapeDtypeStruct((1, b_pad), jnp.float32),
        grid=grid,
        in_specs=in_specs,
        out_specs=out_specs,
        compiler_params=pltpu.CompilerParams(
            dimension_semantics=("parallel",),
            vmem_limit_bytes=_vmem_limit_bytes(tb, input_dim, weight_bytes)),
        cost_estimate=pl.CostEstimate(
            flops=flops, transcendentals=0, bytes_accessed=bytes_accessed),
    )(x, w1, b1, w2, b2, w3, b3, w4_row, b4)

    # Padded rows hold ReLU-of-bias garbage; slice before anyone consumes it.
    return out_t[0, :B][:, None]                       # back to (B, 1)


# ---------------------------------------------------------------------------
# Init / reference
# ---------------------------------------------------------------------------
def init_params(input_dim, key):
    """Deterministic init mimicking nn.Linear; weights stored transposed (in, out).
    (PyTorch Linear weights are (out, in) — transpose them when importing.)"""
    dims = [input_dim, 128, 64, 32, 1]
    params = []
    for i in range(len(dims) - 1):
        fan_in, fan_out = dims[i], dims[i + 1]
        key, kw, kb = jax.random.split(key, 3)
        bound = 1.0 / jnp.sqrt(fan_in)
        w_t = jax.random.uniform(kw, (fan_in, fan_out), jnp.float32, -bound, bound)
        b = jax.random.uniform(kb, (1, fan_out), jnp.float32, -bound, bound)
        params.append((w_t, b))
    return params


def reference_forward(x, params):
    h = x
    for i, (w, b) in enumerate(params):
        h = h @ w + b
        if i < len(params) - 1:
            h = jnp.maximum(h, 0.0)
    return h


if __name__ == "__main__":
    key = jax.random.PRNGKey(0)
    input_dim = 16

    k_x, k_p, k_x2 = jax.random.split(key, 3)
    params = init_params(input_dim, k_p)

    # Small batch (single grid step).
    x = jax.random.normal(k_x, (8, input_dim), jnp.float32)
    out = jax.block_until_ready(hdbnet_forward(x, params))
    ref = reference_forward(x, params)
    assert out.shape == (8, 1), out.shape
    # bf16 matmul operands with f32 accumulation -> loosened tolerance.
    assert jnp.allclose(out, ref, atol=3e-2, rtol=3e-2), "mismatch vs reference (B=8)"

    # Slightly larger batch: exercises multi-step grid + padding slice-off.
    x2 = jax.random.normal(k_x2, (300, input_dim), jnp.float32)
    out2 = jax.block_until_ready(hdbnet_forward(x2, params))
    ref2 = reference_forward(x2, params)
    assert out2.shape == (300, 1), out2.shape
    assert jnp.allclose(out2, ref2, atol=3e-2, rtol=3e-2), "mismatch vs reference (B=300)"

    print("KERNEL_OK")
</pallas_src>

<mosaic_0001>
module attributes {stable_mosaic.version = 11 : i64} {
  func.func @hdbnet_kernel(%arg0: i32, %arg1: memref<128x16xf32, #tpu.memory_space<vmem>>, %arg2: memref<16x128xbf16, #tpu.memory_space<vmem>>, %arg3: memref<1x128xf32, #tpu.memory_space<vmem>>, %arg4: memref<128x64xbf16, #tpu.memory_space<vmem>>, %arg5: memref<1x64xf32, #tpu.memory_space<vmem>>, %arg6: memref<64x32xbf16, #tpu.memory_space<vmem>>, %arg7: memref<1x32xf32, #tpu.memory_space<vmem>>, %arg8: memref<1x32xbf16, #tpu.memory_space<vmem>>, %arg9: memref<1x1xf32, #tpu.memory_space<vmem>>, %arg10: memref<1x128xf32, #tpu.memory_space<vmem>>) attributes {dimension_semantics = [#tpu.dimension_semantics<parallel>], iteration_bounds = array<i64: 1>, scalar_prefetch = 0 : i64, scratch_operands = 0 : i64, tpu.core_type = #tpu.core_type<tc>, window_params = [{transform_indices = @transform_0, window_bounds = array<i64: 128, 16>}, {pipeline_mode = #tpu.pipeline_mode<synchronous>, transform_indices = @transform_1, window_bounds = array<i64: 16, 128>}, {pipeline_mode = #tpu.pipeline_mode<synchronous>, transform_indices = @transform_2, window_bounds = array<i64: 1, 128>}, {pipeline_mode = #tpu.pipeline_mode<synchronous>, transform_indices = @transform_3, window_bounds = array<i64: 128, 64>}, {pipeline_mode = #tpu.pipeline_mode<synchronous>, transform_indices = @transform_4, window_bounds = array<i64: 1, 64>}, {pipeline_mode = #tpu.pipeline_mode<synchronous>, transform_indices = @transform_5, window_bounds = array<i64: 64, 32>}, {pipeline_mode = #tpu.pipeline_mode<synchronous>, transform_indices = @transform_6, window_bounds = array<i64: 1, 32>}, {pipeline_mode = #tpu.pipeline_mode<synchronous>, transform_indices = @transform_7, window_bounds = array<i64: 1, 32>}, {pipeline_mode = #tpu.pipeline_mode<synchronous>, transform_indices = @transform_8, window_bounds = array<i64: 1, 1>}, {transform_indices = @transform_9, window_bounds = array<i64: 1, 128>}]} {
    %c0 = arith.constant 0 : index
    %c0_0 = arith.constant 0 : index
    %0 = vector.load %arg1[%c0, %c0_0] : memref<128x16xf32, #tpu.memory_space<vmem>>, vector<128x16xf32>
    %1 = arith.truncf %0 : vector<128x16xf32> to vector<128x16xbf16>
    %c0_1 = arith.constant 0 : index
    %c0_2 = arith.constant 0 : index
    %2 = vector.load %arg2[%c0_1, %c0_2] : memref<16x128xbf16, #tpu.memory_space<vmem>>, vector<16x128xbf16>
    %cst = arith.constant dense<0.000000e+00> : vector<128x128xf32>
    %3 = tpu.matmul %1, %2, %cst {dimension_numbers = #tpu.dot_dimension_numbers<[1], [0], [0], [1], [0, 0, 1, 1], [], []>} : vector<128x16xbf16>, vector<16x128xbf16>, vector<128x128xf32> -> vector<128x128xf32>
    %c0_3 = arith.constant 0 : index
    %c0_4 = arith.constant 0 : index
    %4 = vector.load %arg3[%c0_3, %c0_4] : memref<1x128xf32, #tpu.memory_space<vmem>>, vector<1x128xf32>
    %5 = vector.broadcast %4 : vector<1x128xf32> to vector<128x128xf32>
    %6 = arith.addf %3, %5 : vector<128x128xf32>
    %cst_5 = arith.constant 0.000000e+00 : f32
    %7 = vector.broadcast %cst_5 : f32 to vector<128x128xf32>
    %8 = arith.maximumf %6, %7 : vector<128x128xf32>
    %9 = arith.truncf %8 : vector<128x128xf32> to vector<128x128xbf16>
    %c0_6 = arith.constant 0 : index
    %c0_7 = arith.constant 0 : index
    %10 = vector.load %arg4[%c0_6, %c0_7] : memref<128x64xbf16, #tpu.memory_space<vmem>>, vector<128x64xbf16>
    %cst_8 = arith.constant dense<0.000000e+00> : vector<128x64xf32>
    %11 = tpu.matmul %9, %10, %cst_8 {dimension_numbers = #tpu.dot_dimension_numbers<[1], [0], [0], [1], [0, 0, 1, 1], [], []>} : vector<128x128xbf16>, vector<128x64xbf16>, vector<128x64xf32> -> vector<128x64xf32>
    %c0_9 = arith.constant 0 : index
    %c0_10 = arith.constant 0 : index
    %12 = vector.load %arg5[%c0_9, %c0_10] : memref<1x64xf32, #tpu.memory_space<vmem>>, vector<1x64xf32>
    %13 = vector.broadcast %12 : vector<1x64xf32> to vector<128x64xf32>
    %14 = arith.addf %11, %13 : vector<128x64xf32>
    %cst_11 = arith.constant 0.000000e+00 : f32
    %15 = vector.broadcast %cst_11 : f32 to vector<128x64xf32>
    %16 = arith.maximumf %14, %15 : vector<128x64xf32>
    %17 = arith.truncf %16 : vector<128x64xf32> to vector<128x64xbf16>
    %c0_12 = arith.constant 0 : index
    %c0_13 = arith.constant 0 : index
    %18 = vector.load %arg6[%c0_12, %c0_13] : memref<64x32xbf16, #tpu.memory_space<vmem>>, vector<64x32xbf16>
    %cst_14 = arith.constant dense<0.000000e+00> : vector<128x32xf32>
    %19 = tpu.matmul %17, %18, %cst_14 {dimension_numbers = #tpu.dot_dimension_numbers<[1], [0], [0], [1], [0, 0, 1, 1], [], []>} : vector<128x64xbf16>, vector<64x32xbf16>, vector<128x32xf32> -> vector<128x32xf32>
    %c0_15 = arith.constant 0 : index
    %c0_16 = arith.constant 0 : index
    %20 = vector.load %arg7[%c0_15, %c0_16] : memref<1x32xf32, #tpu.memory_space<vmem>>, vector<1x32xf32>
    %21 = vector.broadcast %20 : vector<1x32xf32> to vector<128x32xf32>
    %22 = arith.addf %19, %21 : vector<128x32xf32>
    %cst_17 = arith.constant 0.000000e+00 : f32
    %23 = vector.broadcast %cst_17 : f32 to vector<128x32xf32>
    %24 = arith.maximumf %22, %23 : vector<128x32xf32>
    %c0_18 = arith.constant 0 : index
    %c0_19 = arith.constant 0 : index
    %25 = vector.load %arg8[%c0_18, %c0_19] : memref<1x32xbf16, #tpu.memory_space<vmem>>, vector<1x32xbf16>
    %26 = arith.truncf %24 : vector<128x32xf32> to vector<128x32xbf16>
    %cst_20 = arith.constant dense<0.000000e+00> : vector<1x128xf32>
    %27 = tpu.matmul %25, %26, %cst_20 {dimension_numbers = #tpu.dot_dimension_numbers<[1], [1], [0], [0], [0, 0, 1, 0], [], []>} : vector<1x32xbf16>, vector<128x32xbf16>, vector<1x128xf32> -> vector<1x128xf32>
    %c0_21 = arith.constant 0 : index
    %c0_22 = arith.constant 0 : index
    %28 = vector.load %arg9[%c0_21, %c0_22] : memref<1x1xf32, #tpu.memory_space<vmem>>, vector<1x1xf32>
    %29 = vector.broadcast %28 : vector<1x1xf32> to vector<1x128xf32>
    %30 = arith.addf %27, %29 : vector<1x128xf32>
    %c0_23 = arith.constant 0 : index
    %c0_24 = arith.constant 0 : index
    %31 = vector.load %arg10[%c0_23, %c0_24] : memref<1x128xf32, #tpu.memory_space<vmem>>, vector<1x128xf32>
    tpu.vector_store %arg10[%c0_23, %c0_24], %30 {strides = array<i32>} : memref<1x128xf32, #tpu.memory_space<vmem>>, vector<1x128xf32>,
    return
  }
  func.func @transform_0(%arg0: i32) -> (i32, i32) {
    %c0_i32 = arith.constant 0 : i32
    %c0_i32_0 = arith.constant 0 : i32
    return %arg0, %c0_i32 : i32, i32
  }
  func.func @transform_1(%arg0: i32) -> (i32, i32) {
    %c0_i32 = arith.constant 0 : i32
    %c0_i32_0 = arith.constant 0 : i32
    %c0_i32_1 = arith.constant 0 : i32
    return %c0_i32, %c0_i32_0 : i32, i32
  }
  func.func @transform_2(%arg0: i32) -> (i32, i32) {
    %c0_i32 = arith.constant 0 : i32
    %c0_i32_0 = arith.constant 0 : i32
    %c0_i32_1 = arith.constant 0 : i32
    return %c0_i32, %c0_i32_0 : i32, i32
  }
  func.func @transform_3(%arg0: i32) -> (i32, i32) {
    %c0_i32 = arith.constant 0 : i32
    %c0_i32_0 = arith.constant 0 : i32
    %c0_i32_1 = arith.constant 0 : i32
    return %c0_i32, %c0_i32_0 : i32, i32
  }
  func.func @transform_4(%arg0: i32) -> (i32, i32) {
    %c0_i32 = arith.constant 0 : i32
    %c0_i32_0 = arith.constant 0 : i32
    %c0_i32_1 = arith.constant 0 : i32
    return %c0_i32, %c0_i32_0 : i32, i32
  }
  func.func @transform_5(%arg0: i32) -> (i32, i32) {
    %c0_i32 = arith.constant 0 : i32
    %c0_i32_0 = arith.constant 0 : i32
    %c0_i32_1 = arith.constant 0 : i32
    return %c0_i32, %c0_i32_0 : i32, i32
  }
  func.func @transform_6(%arg0: i32) -> (i32, i32) {
    %c0_i32 = arith.constant 0 : i32
    %c0_i32_0 = arith.constant 0 : i32
    %c0_i32_1 = arith.constant 0 : i32
    return %c0_i32, %c0_i32_0 : i32, i32
  }
  func.func @transform_7(%arg0: i32) -> (i32, i32) {
    %c0_i32 = arith.constant 0 : i32
    %c0_i32_0 = arith.constant 0 : i32
    %c0_i32_1 = arith.constant 0 : i32
    return %c0_i32, %c0_i32_0 : i32, i32
  }
  func.func @transform_8(%arg0: i32) -> (i32, i32) {
    %c0_i32 = arith.constant 0 : i32
    %c0_i32_0 = arith.constant 0 : i32
    %c0_i32_1 = arith.constant 0 : i32
    return %c0_i32, %c0_i32_0 : i32, i32
  }
  func.func @transform_9(%arg0: i32) -> (i32, i32) {
    %c0_i32 = arith.constant 0 : i32
    %c0_i32_0 = arith.constant 0 : i32
    return %c0_i32, %arg0 : i32, i32
  }
}

</mosaic_0001>

<bundles_post_ra>
// kernel: tpu_custom_call.1
= control target key start
LH: loop header
LB: loop body
LE: loop exit
PB: predicated region body
PF: predicated region fallthrough
CT: control target
= control target key end

     0   :  { %s1109_s0 = inlined_call_operand.vmem [shape: f32[128,16], index: 0, kind: input, shape index: {}]   ;;  %s1110_s1 = inlined_call_operand.vmem [shape: bf16[16,128], index: 1, kind: input, shape index: {}]   ;;  %s1111_s2 = inlined_call_operand.vmem [shape: f32[1,128], index: 2, kind: input, shape index: {}]   ;;  %s1112_s3 = inlined_call_operand.vmem [shape: bf16[128,64], index: 3, kind: input, shape index: {}]   ;;  %s1113_s4 = inlined_call_operand.vmem [shape: f32[1,64], index: 4, kind: input, shape index: {}]   ;;  %s1114_s5 = inlined_call_operand.vmem [shape: bf16[64,32], index: 5, kind: input, shape index: {}]   ;;  %s1115_s6 = inlined_call_operand.vmem [shape: f32[1,32], index: 6, kind: input, shape index: {}]   ;;  %s1116_s7 = inlined_call_operand.vmem [shape: bf16[1,32], index: 7, kind: input, shape index: {}]   ;;  %s1117_s8 = inlined_call_operand.<no memory space> [shape: f32[1,1], index: 8, kind: input, shape index: {}]   ;;  %s1118_s9 = inlined_call_operand.hbm [shape: f32[1,128], index: 9, kind: output, shape index: {}]  }
   0x1   :  { %v14_v0 = vstv %s1117_s8 }
   0x2   :  { %15 = vst [vmem:[#allocation2] sm:$0x1] %v14_v0 }
   0x3   :  { %v870_v1 = vld [vmem:[%s1110_s1] sm:$0xff]   ;;  %v37_v3 = vld [vmem:[%s1109_s0 + $0x8] sm:$0xff]  ;;  %vm75_vm0 = vcmask 130048   ;;  %v38_v4 = vld [vmem:[%s1109_s0 + $0x10] sm:$0xff] }
   0x4   :  { %v36_v2 = vld [vmem:[%s1109_s0] sm:$0xff]  ;;  %771 = vmatprep.subr.bf16.mxu0 %v870_v1  ;;  %v39_v6 = vld [vmem:[%s1109_s0 + $0x18] sm:$0xff]  ;;  %v41_v8 = vld [vmem:[%s1109_s0 + $0x28] sm:$0xff] }
   0x5   :  { %v52_v5 = vpack.c.bf16 %v37_v3, %v36_v2  ;;  %v40_v7 = vld [vmem:[%s1109_s0 + $0x20] sm:$0xff]  ;;  %772 = vmatpush3.bf16.msra.mxu0 %v870_v1  ;;  %v53_v9 = vpack.c.bf16 %v39_v6, %v38_v4  ;;  %v42_v11 = vld [vmem:[%s1109_s0 + $0x30] sm:$0xff]  ;;  %v43_v12 = vld [vmem:[%s1109_s0 + $0x38] sm:$0xff] }
   0x6   :  { %v54_v10 = vpack.c.bf16 %v41_v8, %v40_v7  ;;  %v44_v13 = vld [vmem:[%s1109_s0 + $0x40] sm:$0xff]  ;;  %v45_v14 = vld [vmem:[%s1109_s0 + $0x48] sm:$0xff]  ;;  %v55_v17 = vpack.c.bf16 %v43_v12, %v42_v11  ;;  %v873_v19 = vld [vmem:[%s1112_s3 + $0x10] sm:$0xff]  }
   0x7   :  { %773 = vmatprep.mubr.msk.bf16.mxu0 %vm75_vm0, %v52_v5  ;;  %v871_v15 = vld [vmem:[%s1112_s3] sm:$0xff]   ;;  %v872_v16 = vld [vmem:[%s1112_s3 + $0x8] sm:$0xff]   ;;  %v56_v18 = vpack.c.bf16 %v45_v14, %v44_v13  ;;  %v46_v20 = vld [vmem:[%s1109_s0 + $0x50] sm:$0xff] }
   0x8   :  { %774 = vmatmul.mubr.msk.bf16.vlgmr.msra.gmra.mrb[0].mxu0 %vm75_vm0, %v53_v9  ;;  %789 = vmatprep.subr.bf16.mxu0 %v871_v15  ;;  %v47_v21 = vld [vmem:[%s1109_s0 + $0x58] sm:$0xff]  ;;  %v48_v22 = vld [vmem:[%s1109_s0 + $0x60] sm:$0xff]  ;;  %v49_v23 = vld [vmem:[%s1109_s0 + $0x68] sm:$0xff] }
   0x9   :  { %777 = vmatprep.mubr.msk.bf16.mxu0 %vm75_vm0, %v54_v10  ;;  %790 = vmatpush3.bf16.msra.mxu0 %v871_v15  ;;  %v874_v24 = vld [vmem:[%s1112_s3 + $0x18] sm:$0xff]  }
   0xa   :  { %791 = vmatprep.subr.bf16.mxu0 %v872_v16 }
   0xd   :  { %792 = vmatpush3.bf16.msra.mxu0 %v872_v16 }
   0xe   :  { %793 = vmatprep.subr.bf16.mxu0 %v873_v19 }
  0x10   :  { %778 = vmatmul.mubr.msk.bf16.gmra.mrb[4].mxu0 %vm75_vm0, %v55_v17 }
  0x11   :  { %781 = vmatprep.mubr.msk.bf16.mxu0 %vm75_vm0, %v56_v18 }
  0x12   :  { %16 = vsyncpa [#allocation4], 0  ;;  %v57_v25 = vpack.c.bf16 %v47_v21, %v46_v20  ;;  %v58_v26 = vpack.c.bf16 %v49_v23, %v48_v22  ;;  %794 = vmatpush3.bf16.msra.mxu0 %v873_v19  ;;  %v875_v27 = vld [vmem:[%s1112_s3 + $0x20] sm:$0xff]   ;;  %v50_v28 = vld [vmem:[%s1109_s0 + $0x70] sm:$0xff]  ;;  %vm452_vm1 = vcmask 523264   ;;  %vm908_vm2 = vmmov 0  }
  0x13   :  { %795 = vmatprep.subr.bf16.mxu0 %v874_v24  ;;  %v51_v29 = vld [vmem:[%s1109_s0 + $0x78] sm:$0xff]  ;;  %v876_v30 = vld [vmem:[%s1112_s3 + $0x28] sm:$0xff]   ;;  %v877_v32 = vld [vmem:[%s1112_s3 + $0x30] sm:$0xff]   ;;  %vm609_vm3 = vcmask 261120   ;;  %s910_s23 = smov [#allocation3]  }
  0x14   :  { %v59_v31 = vpack.c.bf16 %v51_v29, %v50_v28  ;;  %v878_v33 = vld [vmem:[%s1112_s3 + $0x38] sm:$0xff]   ;;  %v879_v34 = vld [vmem:[%s1114_s5] sm:$0xff]   ;;  %v880_v35 = vld [vmem:[%s1114_s5 + $0x8] sm:$0xff]   ;;  %s684_s24 = sshll.u32 %s910_s23, 4  ;;  %s685_s24 = int_to_ptr.vmem [resolvable:$true] %s684_s24 }
  0x15   :  { %821 = vmatprep.subr.bf16.mxu1 %v879_v34  ;;  %v692_v36 = vld [vmem:[%s1111_s2] ss:$0 sm:$0xff]  ;;  %v881_v29 = vld [vmem:[%s1114_s5 + $0x10] sm:$0xff]   ;;  %s883_s25 = scalar_lea.vmem %s685_s24, 16  ;;  %s887_s26 = scalar_lea.vmem %s685_s24, 32 }
  0x16   :  { %796 = vmatpush3.bf16.msra.mxu0 %v874_v24  ;;  %822 = vmatpush3.bf16.msra.mxu1 %v879_v34  ;;  %p884_p0 = scmp.ne.s32.totalorder %s685_s24, %s883_s25  ;;  %p888_p1 = scmp.lt.s32.totalorder %s685_s24, %s685_s24 }
  0x17   :  { %797 = vmatprep.subr.bf16.mxu0 %v875_v27  ;;  %823 = vmatprep.subr.bf16.mxu1 %v880_v35  ;;  %p889_p2 = scmp.lt.s32.totalorder %s887_s26, %s883_s25 }
  0x18   :  { %782 = vmatmul.mubr.msk.bf16.gmra.mrb[8].mxu0 %vm75_vm0, %v57_v25 }
  0x19   :  { %785 = vmatprep.mubr.msk.bf16.mxu0 %vm75_vm0, %v58_v26  ;;  %p890_p3 = por %p889_p2, %p888_p1 }
  0x1a   :  { %798 = vmatpush3.bf16.msra.mxu0 %v875_v27  ;;  %824 = vmatpush3.bf16.msra.mxu1 %v880_v35 }
  0x1b   :  { %799 = vmatprep.subr.bf16.mxu0 %v876_v30  ;;  %825 = vmatprep.subr.bf16.mxu1 %v881_v29  ;;  %p891_p4 = pnand %p890_p3, %p884_p0 }
  0x1e   :  { %800 = vmatpush3.bf16.msra.mxu0 %v876_v30  ;;  %826 = vmatpush3.bf16.msra.mxu1 %v881_v29  ;;  %v882_v30 = vld [vmem:[%s1114_s5 + $0x18] sm:$0xff]  }
  0x1f   :  { %801 = vmatprep.subr.bf16.mxu0 %v877_v32  ;;  %827 = vmatprep.subr.bf16.mxu1 %v882_v30 }
  0x20   :  { %786 = vmatmul.mubr.msk.bf16.gmra.mrb[12].mxu0 %vm75_vm0, %v59_v31  ;;  %v702_v31 = vld [vmem:[%s1113_s4] ss:$0 sm:$0xff] }
  0x22   :  { %802 = vmatpush3.bf16.msra.mxu0 %v877_v32  ;;  %828 = vmatpush3.bf16.msra.mxu1 %v882_v30 }
  0x23   :  { %803 = vmatprep.subr.bf16.mxu0 %v878_v33 }
  0x26   :  { %804 = vmatpush3.bf16.msra.mxu0 %v878_v33 }
  0xdb   :  { %v775_v37 = vpop.f32.mrb[0].mxu0 }
  0xdc   :  { %v143_v38 = vadd.f32 %v775_v37, %v692_v36  ;;  %v134_v39 = vpop.f32.mrb[1].mxu0 }
  0xdd   :  { %v135_v40 = vadd.f32 %v692_v36, %v134_v39  ;;  %v776_v41 = vpop.f32.mrb[2].mxu0 }
  0xde   :  { %v146_v42 = vadd.f32 %v776_v41, %v692_v36  ;;  %v137_v43 = vpop.f32.mrb[3].mxu0  ;;  %v199_v45 = vmax.f32 %v143_v38, 0.0 }
  0xdf   :  { %v138_v44 = vadd.f32 %v692_v36, %v137_v43  ;;  %v197_v47 = vmax.f32 %v135_v40, 0.0 }
  0xe0   :  { %v200_v46 = vmax.f32 %v146_v42, 0.0 }
  0xe1   :  { %v198_v48 = vmax.f32 %v138_v44, 0.0 }
  0xe2   :  { %v214_v49 = vpack.c.bf16 %v200_v46, %v199_v45 }
  0xe3   :  { %v213_v50 = vpack.c.bf16 %v198_v48, %v197_v47  ;;  %v779_v51 = vpop.f32.mrb[4].mxu0 }
  0xe4   :  { %v159_v52 = vadd.f32 %v779_v51, %v692_v36  ;;  %v150_v53 = vpop.f32.mrb[5].mxu0 }
  0xe5   :  { %v151_v54 = vadd.f32 %v692_v36, %v150_v53  ;;  %v780_v55 = vpop.f32.mrb[6].mxu0  ;;  %805 = vmatprep.mubr.bf16.mxu0 %v213_v50 }
  0xe6   :  { %v203_v56 = vmax.f32 %v159_v52, 0.0  ;;  %v162_v57 = vadd.f32 %v780_v55, %v692_v36  ;;  %v153_v58 = vpop.f32.mrb[7].mxu0  ;;  %806 = vmatmul.mubr.bf16.vlgmr.msra.gmra.mrb[16].mxu0 %v214_v49 }
  0xe7   :  { %v201_v59 = vmax.f32 %v151_v54, 0.0  ;;  %v154_v60 = vadd.f32 %v692_v36, %v153_v58 }
  0xe8   :  { %v204_v61 = vmax.f32 %v162_v57, 0.0 }
  0xe9   :  { %v202_v62 = vmax.f32 %v154_v60, 0.0 }
  0xea   :  { %v216_v63 = vpack.c.bf16 %v204_v61, %v203_v56 }
  0xeb   :  { %v215_v0 = vpack.c.bf16 %v202_v62, %v201_v59  ;;  %v783_v1 = vpop.f32.mrb[8].mxu0 }
  0xec   :  { %v175_v2 = vadd.f32 %v783_v1, %v692_v36  ;;  %v166_v3 = vpop.f32.mrb[9].mxu0 }
  0xed   :  { %809 = vmatprep.mubr.bf16.mxu0 %v215_v0  ;;  %v167_v4 = vadd.f32 %v692_v36, %v166_v3  ;;  %v784_v5 = vpop.f32.mrb[10].mxu0 }
  0xee   :  { %810 = vmatmul.mubr.bf16.gmra.mrb[20].mxu0 %v216_v63  ;;  %v207_v6 = vmax.f32 %v175_v2, 0.0  ;;  %v178_v7 = vadd.f32 %v784_v5, %v692_v36  ;;  %v169_v8 = vpop.f32.mrb[11].mxu0 }
  0xef   :  { %v205_v9 = vmax.f32 %v167_v4, 0.0  ;;  %v170_v10 = vadd.f32 %v692_v36, %v169_v8 }
  0xf0   :  { %v208_v11 = vmax.f32 %v178_v7, 0.0 }
  0xf1   :  { %v206_v12 = vmax.f32 %v170_v10, 0.0 }
  0xf2   :  { %v218_v13 = vpack.c.bf16 %v208_v11, %v207_v6 }
  0xf3   :  { %v217_v14 = vpack.c.bf16 %v206_v12, %v205_v9  ;;  %v787_v15 = vpop.f32.mrb[12].mxu0 }
  0xf4   :  { %v191_v16 = vadd.f32 %v787_v15, %v692_v36  ;;  %v182_v17 = vpop.f32.mrb[13].mxu0 }
  0xf5   :  { %813 = vmatprep.mubr.bf16.mxu0 %v217_v14  ;;  %v183_v18 = vadd.f32 %v692_v36, %v182_v17  ;;  %v788_v19 = vpop.f32.mrb[14].mxu0 }
  0xf6   :  { %814 = vmatmul.mubr.bf16.gmra.mrb[24].mxu0 %v218_v13  ;;  %v211_v20 = vmax.f32 %v191_v16, 0.0  ;;  %v194_v21 = vadd.f32 %v788_v19, %v692_v36  ;;  %v185_v22 = vpop.f32.mrb[15].mxu0 }
  0xf7   :  { %v209_v23 = vmax.f32 %v183_v18, 0.0  ;;  %v186_v24 = vadd.f32 %v692_v36, %v185_v22 }
  0xf8   :  { %v212_v25 = vmax.f32 %v194_v21, 0.0 }
  0xf9   :  { %v210_v26 = vmax.f32 %v186_v24, 0.0  ;;  %v907_v24 = vmov 0.0  }
  0xfa   :  { %v220_v27 = vpack.c.bf16 %v212_v25, %v211_v20  ;;  %845 = vmatprep.subr.bf16.mxu1 %v907_v24  ;;  %v599_v25 = vld [vmem:[#allocation2] sm:$0x1] }
  0xfb   :  { %v219_v28 = vpack.c.bf16 %v210_v26, %v209_v23  ;;  %v909_v26 = vmov 0  }
  0xfc   :  { %869 = vset.pattern.permute.xlu0 %v909_v26 }
  0xfd   :  { %817 = vmatprep.mubr.bf16.mxu0 %v219_v28  ;;  %602 = vperm.xlu0 %869, %v599_v25  }
  0xfe   :  { %818 = vmatmul.mubr.bf16.gmra.mrb[28].mxu0 %v220_v27  ;;  %v711_v27 = vld [vmem:[%s1115_s6] ss:$0 sm:$0xff] }
 0x1b9   :  { %v807_v32 = vpop.f32.mrb[16].mxu0 }
 0x1ba   :  { %v335_v33 = vadd.f32 %v807_v32, %v702_v31  ;;  %v326_v34 = vpop.f32.mrb[17].mxu0 }
 0x1bb   :  { %v327_v35 = vadd.f32 %v702_v31, %v326_v34  ;;  %v808_v36 = vpop.f32.mrb[18].mxu0 }
 0x1bc   :  { %v338_v37 = vadd.f32 %v808_v36, %v702_v31  ;;  %v329_v38 = vpop.f32.mrb[19].mxu0  ;;  %v391_v40 = vmax.f32 %v335_v33, 0.0 }
 0x1bd   :  { %v330_v39 = vadd.f32 %v702_v31, %v329_v38  ;;  %v389_v42 = vmax.f32 %v327_v35, 0.0 }
 0x1be   :  { %v392_v41 = vmax.f32 %v338_v37, 0.0 }
 0x1bf   :  { %v390_v43 = vmax.f32 %v330_v39, 0.0 }
 0x1c0   :  { %v406_v44 = vpack.c.bf16 %v392_v41, %v391_v40 }
 0x1c1   :  { %v811_v45 = vpop.f32.mrb[20].mxu0  ;;  %v405_v46 = vpack.c.bf16 %v390_v43, %v389_v42 }
 0x1c2   :  { %v351_v47 = vadd.f32 %v811_v45, %v702_v31  ;;  %v342_v48 = vpop.f32.mrb[21].mxu0 }
 0x1c3   :  { %v343_v49 = vadd.f32 %v702_v31, %v342_v48  ;;  %v812_v50 = vpop.f32.mrb[22].mxu0  ;;  %829 = vmatprep.mubr.msk.bf16.mxu1 %vm452_vm1, %v405_v46 }
 0x1c4   :  { %v395_v51 = vmax.f32 %v351_v47, 0.0  ;;  %v354_v52 = vadd.f32 %v812_v50, %v702_v31  ;;  %v345_v53 = vpop.f32.mrb[23].mxu0  ;;  %830 = vmatmul.mubr.msk.bf16.vlgmr.msra.gmra.mrb[0].mxu1 %vm452_vm1, %v406_v44 }
 0x1c5   :  { %v393_v54 = vmax.f32 %v343_v49, 0.0  ;;  %v346_v55 = vadd.f32 %v702_v31, %v345_v53 }
 0x1c6   :  { %v396_v56 = vmax.f32 %v354_v52, 0.0 }
 0x1c7   :  { %v394_v57 = vmax.f32 %v346_v55, 0.0 }
 0x1c8   :  { %v408_v58 = vpack.c.bf16 %v396_v56, %v395_v51 }
 0x1c9   :  { %v407_v59 = vpack.c.bf16 %v394_v57, %v393_v54  ;;  %v815_v60 = vpop.f32.mrb[24].mxu0 }
 0x1ca   :  { %v367_v61 = vadd.f32 %v815_v60, %v702_v31  ;;  %v358_v62 = vpop.f32.mrb[25].mxu0 }
 0x1cb   :  { %833 = vmatprep.mubr.msk.bf16.mxu1 %vm452_vm1, %v407_v59  ;;  %v359_v63 = vadd.f32 %v702_v31, %v358_v62  ;;  %v816_v0 = vpop.f32.mrb[26].mxu0 }
 0x1cc   :  { %834 = vmatmul.mubr.msk.bf16.gmra.mrb[4].mxu1 %vm452_vm1, %v408_v58  ;;  %v399_v1 = vmax.f32 %v367_v61, 0.0  ;;  %v370_v2 = vadd.f32 %v816_v0, %v702_v31  ;;  %v361_v3 = vpop.f32.mrb[27].mxu0 }
 0x1cd   :  { %v397_v4 = vmax.f32 %v359_v63, 0.0  ;;  %v362_v5 = vadd.f32 %v702_v31, %v361_v3 }
 0x1ce   :  { %v400_v6 = vmax.f32 %v370_v2, 0.0 }
 0x1cf   :  { %v398_v7 = vmax.f32 %v362_v5, 0.0 }
 0x1d0   :  { %v410_v8 = vpack.c.bf16 %v400_v6, %v399_v1 }
 0x1d1   :  { %v409_v9 = vpack.c.bf16 %v398_v7, %v397_v4  ;;  %v819_v10 = vpop.f32.mrb[28].mxu0 }
 0x1d2   :  { %v383_v11 = vadd.f32 %v819_v10, %v702_v31  ;;  %v374_v12 = vpop.f32.mrb[29].mxu0 }
 0x1d3   :  { %837 = vmatprep.mubr.msk.bf16.mxu1 %vm452_vm1, %v409_v9  ;;  %v375_v13 = vadd.f32 %v702_v31, %v374_v12  ;;  %v820_v14 = vpop.f32.mrb[30].mxu0 }
 0x1d4   :  { %838 = vmatmul.mubr.msk.bf16.gmra.mrb[8].mxu1 %vm452_vm1, %v410_v8  ;;  %v403_v15 = vmax.f32 %v383_v11, 0.0  ;;  %v386_v16 = vadd.f32 %v820_v14, %v702_v31  ;;  %v377_v17 = vpop.f32.mrb[31].mxu0 }
 0x1d5   :  { %v401_v18 = vmax.f32 %v375_v13, 0.0  ;;  %v378_v19 = vadd.f32 %v702_v31, %v377_v17 }
 0x1d6   :  { %v404_v20 = vmax.f32 %v386_v16, 0.0 }
 0x1d7   :  { %v402_v21 = vmax.f32 %v378_v19, 0.0 }
 0x1d8   :  { %v412_v22 = vpack.c.bf16 %v404_v20, %v403_v15 }
 0x1d9   :  { %v411_v23 = vpack.c.bf16 %v402_v21, %v401_v18 }
 0x1db   :  { %841 = vmatprep.mubr.msk.bf16.mxu1 %vm452_vm1, %v411_v23 }
 0x1dc   :  { %842 = vmatmul.mubr.msk.bf16.gmra.mrb[12].mxu1 %vm452_vm1, %v412_v22 }
 0x1dd   :  { %861 = vmatprep.mubr.msk.bf16.mxu1 %vm908_vm2, %v907_v24 }
 0x297   :  { %v831_v28 = vpop.f32.mrb[0].mxu1 }
 0x298   :  { %v520_v29 = vadd.f32 %v831_v28, %v711_v27  ;;  %v511_v30 = vpop.f32.mrb[1].mxu1 }
 0x299   :  { %v512_v31 = vadd.f32 %v711_v27, %v511_v30  ;;  %v832_v32 = vpop.f32.mrb[2].mxu1  ;;  %v605_v30 = vlaneseq }
 0x29a   :  { %v523_v33 = vadd.f32 %v832_v32, %v711_v27  ;;  %v514_v34 = vpop.f32.mrb[3].mxu1  ;;  %v576_v36 = vmax.f32 %v520_v29, 0.0  ;;  %v590_v29 = vld [vmem:[%s1116_s7] sm:$0x1] }
 0x29b   :  { %v515_v35 = vadd.f32 %v711_v27, %v514_v34  ;;  %v574_v38 = vmax.f32 %v512_v31, 0.0  ;;  %v606_v31 = vshrl.u32 %v605_v30, 7 }
 0x29c   :  { %v577_v37 = vmax.f32 %v523_v33, 0.0  ;;  %v603_v33 = vpop.permute.xlu0 %602 }
 0x29d   :  { %v575_v39 = vmax.f32 %v515_v35, 0.0  ;;  %v607_v32 = vsub.s32 0, %v606_v31 }
 0x29e   :  { %v592_v40 = vpack.c.bf16 %v577_v37, %v576_v36 }
 0x29f   :  { %v591_v41 = vpack.c.bf16 %v575_v39, %v574_v38  ;;  %v835_v42 = vpop.f32.mrb[4].mxu1  ;;  %v608_v34 = vrot.slane %v603_v33, %v607_v32 }
 0x2a0   :  { %v536_v43 = vadd.f32 %v835_v42, %v711_v27  ;;  %v527_v44 = vpop.f32.mrb[5].mxu1  ;;  %v617_v60 = vsel %vm609_vm3, %v592_v40, 0 }
 0x2a1   :  { %v528_v45 = vadd.f32 %v711_v27, %v527_v44  ;;  %v836_v46 = vpop.f32.mrb[6].mxu1  ;;  %v614_v47 = vsel %vm609_vm3, %v591_v41, 0 }
 0x2a2   :  { %v539_v48 = vadd.f32 %v836_v46, %v711_v27  ;;  %v530_v49 = vpop.f32.mrb[7].mxu1  ;;  %846 = vmatpush3.bf16.xpose.msra.mxu1 %v614_v47  ;;  %v580_v51 = vmax.f32 %v536_v43, 0.0 }
 0x2a3   :  { %v531_v50 = vadd.f32 %v711_v27, %v530_v49  ;;  %847 = vmatprep.subr.bf16.mxu1 %v907_v24  ;;  %v578_v53 = vmax.f32 %v528_v45, 0.0 }
 0x2a4   :  { %v581_v52 = vmax.f32 %v539_v48, 0.0 }
 0x2a5   :  { %v579_v54 = vmax.f32 %v531_v50, 0.0 }
 0x2a6   :  { %v594_v55 = vpack.c.bf16 %v581_v52, %v580_v51 }
 0x2a7   :  { %v593_v56 = vpack.c.bf16 %v579_v54, %v578_v53  ;;  %v839_v57 = vpop.f32.mrb[8].mxu1 }
 0x2a8   :  { %v552_v58 = vadd.f32 %v839_v57, %v711_v27  ;;  %v543_v59 = vpop.f32.mrb[9].mxu1  ;;  %v623_v23 = vsel %vm609_vm3, %v594_v55, 0 }
 0x2a9   :  { %v544_v61 = vadd.f32 %v711_v27, %v543_v59  ;;  %v840_v62 = vpop.f32.mrb[10].mxu1  ;;  %v620_v11 = vsel %vm609_vm3, %v593_v56, 0 }
 0x2aa   :  { %848 = vmatpush3.bf16.xpose.msra.mxu1 %v617_v60  ;;  %v584_v63 = vmax.f32 %v552_v58, 0.0  ;;  %v555_v0 = vadd.f32 %v840_v62, %v711_v27  ;;  %v546_v1 = vpop.f32.mrb[11].mxu1 }
 0x2ab   :  { %v582_v2 = vmax.f32 %v544_v61, 0.0  ;;  %v547_v3 = vadd.f32 %v711_v27, %v546_v1  ;;  %849 = vmatprep.subr.bf16.mxu1 %v907_v24 }
 0x2ac   :  { %v585_v4 = vmax.f32 %v555_v0, 0.0 }
 0x2ad   :  { %v583_v5 = vmax.f32 %v547_v3, 0.0 }
 0x2ae   :  { %v596_v6 = vpack.c.bf16 %v585_v4, %v584_v63 }
 0x2af   :  { %v595_v7 = vpack.c.bf16 %v583_v5, %v582_v2  ;;  %v843_v8 = vpop.f32.mrb[12].mxu1 }
 0x2b0   :  { %v568_v9 = vadd.f32 %v843_v8, %v711_v27  ;;  %v559_v10 = vpop.f32.mrb[13].mxu1  ;;  %v629_v26 = vsel %vm609_vm3, %v596_v6, 0 }
 0x2b1   :  { %v560_v12 = vadd.f32 %v711_v27, %v559_v10  ;;  %v844_v13 = vpop.f32.mrb[14].mxu1  ;;  %v626_v25 = vsel %vm609_vm3, %v595_v7, 0 }
 0x2b2   :  { %850 = vmatpush3.bf16.xpose.msra.mxu1 %v620_v11  ;;  %v588_v14 = vmax.f32 %v568_v9, 0.0  ;;  %v571_v15 = vadd.f32 %v844_v13, %v711_v27  ;;  %v562_v16 = vpop.f32.mrb[15].mxu1 }
 0x2b3   :  { %851 = vmatprep.subr.bf16.mxu1 %v907_v24  ;;  %v586_v17 = vmax.f32 %v560_v12, 0.0  ;;  %v563_v18 = vadd.f32 %v711_v27, %v562_v16 }
 0x2b4   :  { %v589_v19 = vmax.f32 %v571_v15, 0.0 }
 0x2b5   :  { %v587_v20 = vmax.f32 %v563_v18, 0.0 }
 0x2b6   :  { %v598_v21 = vpack.c.bf16 %v589_v19, %v588_v14 }
 0x2b7   :  { %v597_v22 = vpack.c.bf16 %v587_v20, %v586_v17 }
 0x2b8   :  { %v635_v28 = vsel %vm609_vm3, %v598_v21, 0 }
 0x2b9   :  { %v632_v27 = vsel %vm609_vm3, %v597_v22, 0 }
 0x2ba   :  { %852 = vmatpush3.bf16.xpose.msra.mxu1 %v623_v23 }
 0x2bb   :  { %853 = vmatprep.subr.bf16.mxu1 %v907_v24 }
 0x2c2   :  { %854 = vmatpush3.bf16.xpose.msra.mxu1 %v626_v25 }
 0x2c3   :  { %855 = vmatprep.subr.bf16.mxu1 %v907_v24 }
 0x2ca   :  { %856 = vmatpush3.bf16.xpose.msra.mxu1 %v629_v26 }
 0x2cb   :  { %857 = vmatprep.subr.bf16.mxu1 %v907_v24 }
 0x2d2   :  { %858 = vmatpush3.bf16.xpose.msra.mxu1 %v632_v27 }
 0x2d3   :  { %859 = vmatprep.subr.bf16.mxu1 %v907_v24 }
 0x2da   :  { %860 = vmatpush3.bf16.xpose.msra.mxu1 %v635_v28 }
 0x2e1   :  { %862 = vmatmul.mubr.msk.bf16.vlgmr.msra.gmra.mrb[16].mxu1 %vm609_vm3, %v590_v29 }
 0x3b4   :  { %v671_v35 = vpop.f32.mrb[16].mxu1 }
 0x3b5   :  { %v672_v36 = vadd.f32 %v671_v35, %v608_v34  ;;  %v863_v37 = vpop.f32.mrb[17].mxu1 }
 0x3b6   :  { %v674_v24 = vpop.f32.mrb[18].mxu1 }
 0x3b7   :  { %677 = vst [vmem:[#allocation3] sm:$0x1] %v672_v36  ;;  %v864_v38 = vpop.f32.mrb[19].mxu1 }
 0x3b8   :  { %894 = shalt.err (!%p891_p4)
}
 0x3b9   :  { %s895_s28 = scalar_lea.hbm %s1118_s9, 16 }
 0x3ba   :  { %p896_p5 = scmp.ne.s32.totalorder %s1118_s9, %s895_s28  ;;  %p899_p6 = scmp.lt.u32.totalorder %s895_s28, %s1118_s9 }
 0x3bc   :  { %p901_p7 = pnand %p899_p6, %p896_p5 }
 0x3be   :  { %904 = shalt.err (!%p901_p7)
}
 0x3bf   :  { %687 = dma.vmem_to_hbm [thread:$0]  %s685_s24, 16, %s1118_s9, [#allocation4]  }
 0x3c0   :  { %905 = dma.done.wait [#allocation4], 16  }
 0x3c1   :  { %906 = vsyncadd [#allocation4], 4294967280 }
 0x3c2   :  { %691 = vsyncpa [#allocation4], 1 }

</bundles_post_ra>
